<compile_context>
chip_gen: v7x
topology: tpu7x:2x2x1
jax: 0.10.0
libtpu: 0.0.40
codegen_flags: <defaults>
</compile_context>

<pallas_src>
import jax
import jax.numpy as jnp
from jax.experimental import pallas as pl
from jax.experimental.pallas import tpu as pltpu

KH, KW = 5, 1   # Conv2d kernel size of conv_5_1


def make_conv51_pallas(N, C_in, C_out, H, W):
    OH = H - (KH - 1)          # stride 1, no padding, no dilation
    OW = W                     # kernel width 1
    HW = H * W
    OHW = OH * OW

    def kernel(x_ref, w_ref, s1_ref, b1_ref, s2_ref, b2_ref, o_ref):
        # x_ref : (1, C_in, H*W)      one batch element, spatial on lanes
        # w_ref : (KH, C_out, C_in)   one (C_out, C_in) matmul per vertical tap
        # s1/b1 : (C_in, 1)           folded BatchNorm2d(in_channels)
        # s2/b2 : (C_out, 1)          folded conv-bias + BatchNorm2d(out_channels)
        # o_ref : (1, C_out, OH*OW)
        x = x_ref[0]                                     # (C_in, H*W)

        # BatchNorm2d(in) + Sigmoid: per-channel scale/shift broadcast along
        # the lane axis (no cross-lane traffic), lane-dense VPU/EUP work.
        h = jax.nn.sigmoid(x * s1_ref[...] + b1_ref[...])        # (C_in, H*W)

        # (5,1) VALID conv: tap kh reads rows [kh, kh+OH) of every column,
        # which in the flattened (C_in, H*W) layout is the contiguous lane
        # slice [kh*W, kh*W + OH*W).  Accumulate 5 MXU matmuls directly in
        # the (C_out, OH*OW) output layout — no reshapes.
        acc = jnp.zeros((C_out, OHW), jnp.float32)
        for kh in range(KH):
            patch = h[:, kh * W: kh * W + OHW]                   # (C_in, OH*OW)
            acc = acc + jnp.dot(w_ref[kh], patch,
                                preferred_element_type=jnp.float32)

        # conv bias + BatchNorm2d(out) folded into scale/shift, then Sigmoid.
        # Dropout(p=0.1) is identity in eval mode.
        out = jax.nn.sigmoid(acc * s2_ref[...] + b2_ref[...])    # (C_out, OH*OW)
        o_ref[0] = out.astype(o_ref.dtype)

    @jax.jit
    def run(x_flat, w_taps, s1, b1, s2, b2):
        return pl.pallas_call(
            kernel,
            out_shape=jax.ShapeDtypeStruct((N, C_out, OHW), jnp.float32),
            grid=(N,),
            in_specs=[
                pl.BlockSpec((1, C_in, HW), lambda n: (n, 0, 0)),
                pl.BlockSpec((KH, C_out, C_in), lambda n: (0, 0, 0)),
                pl.BlockSpec((C_in, 1), lambda n: (0, 0)),
                pl.BlockSpec((C_in, 1), lambda n: (0, 0)),
                pl.BlockSpec((C_out, 1), lambda n: (0, 0)),
                pl.BlockSpec((C_out, 1), lambda n: (0, 0)),
            ],
            out_specs=pl.BlockSpec((1, C_out, OHW), lambda n: (n, 0, 0)),
            compiler_params=pltpu.CompilerParams(
                dimension_semantics=("parallel",)),
        )(x_flat, w_taps, s1, b1, s2, b2)

    return run, OH, OW


def conv51_forward_pallas(x_nchw, params):
    """x_nchw: (N, C_in, H, W) float32. Returns (N, C_out, OH, OW)."""
    N, C_in, H, W = x_nchw.shape
    C_out = params["conv_w"].shape[0]
    eps = 1e-5

    # Fold BN1 (eval mode) into per-input-channel scale/shift, stored (C_in, 1)
    # so they broadcast along lanes inside the kernel.
    inv1 = 1.0 / jnp.sqrt(params["bn1_var"] + eps)
    s1 = params["bn1_gamma"] * inv1
    b1 = params["bn1_beta"] - params["bn1_mean"] * s1

    # Fold conv bias + BN2 (eval mode) into per-output-channel scale/shift.
    inv2 = 1.0 / jnp.sqrt(params["bn2_var"] + eps)
    s2 = params["bn2_gamma"] * inv2
    b2 = (params["conv_b"] - params["bn2_mean"]) * s2 + params["bn2_beta"]

    # Repack weight OIHW (C_out, C_in, 5, 1) -> (KH, C_out, C_in): one
    # (C_out, C_in) matmul operand per vertical tap (tiny, done once).
    w_taps = jnp.transpose(params["conv_w"][:, :, :, 0], (2, 0, 1))

    # Keep NCHW; only flatten the trailing spatial dims (contiguous reshape).
    x_flat = x_nchw.reshape(N, C_in, H * W)

    run, OH, OW = make_conv51_pallas(N, C_in, C_out, H, W)
    out_flat = run(
        x_flat, w_taps,
        s1.reshape(C_in, 1), b1.reshape(C_in, 1),
        s2.reshape(C_out, 1), b2.reshape(C_out, 1),
    )
    return out_flat.reshape(N, C_out, OH, OW)


def conv51_forward_reference(x_nchw, params):
    """Pure-JAX reference of the PyTorch forward (eval mode)."""
    eps = 1e-5
    h = (x_nchw - params["bn1_mean"][None, :, None, None]) / jnp.sqrt(
        params["bn1_var"] + eps)[None, :, None, None]
    h = h * params["bn1_gamma"][None, :, None, None] + params["bn1_beta"][None, :, None, None]
    h = jax.nn.sigmoid(h)
    y = jax.lax.conv_general_dilated(
        h, params["conv_w"],
        window_strides=(1, 1), padding="VALID",
        dimension_numbers=("NCHW", "OIHW", "NCHW"),
    ) + params["conv_b"][None, :, None, None]
    y = (y - params["bn2_mean"][None, :, None, None]) / jnp.sqrt(
        params["bn2_var"] + eps)[None, :, None, None]
    y = y * params["bn2_gamma"][None, :, None, None] + params["bn2_beta"][None, :, None, None]
    # Dropout is identity in eval mode.
    return jax.nn.sigmoid(y)


def init_params(key, C_in, C_out):
    ks = jax.random.split(key, 10)
    fan_in = C_in * KH * KW
    return {
        "conv_w": jax.random.normal(ks[0], (C_out, C_in, KH, KW), jnp.float32) / jnp.sqrt(fan_in),
        "conv_b": 0.1 * jax.random.normal(ks[1], (C_out,), jnp.float32),
        "bn1_gamma": 0.5 + jax.random.uniform(ks[2], (C_in,), jnp.float32),
        "bn1_beta": 0.1 * jax.random.normal(ks[3], (C_in,), jnp.float32),
        "bn1_mean": 0.1 * jax.random.normal(ks[4], (C_in,), jnp.float32),
        "bn1_var": 0.5 + jax.random.uniform(ks[5], (C_in,), jnp.float32),
        "bn2_gamma": 0.5 + jax.random.uniform(ks[6], (C_out,), jnp.float32),
        "bn2_beta": 0.1 * jax.random.normal(ks[7], (C_out,), jnp.float32),
        "bn2_mean": 0.1 * jax.random.normal(ks[8], (C_out,), jnp.float32),
        "bn2_var": 0.5 + jax.random.uniform(ks[9], (C_out,), jnp.float32),
    }


if __name__ == "__main__":
    # conv_5_1(in_channels=4, out_channels=8, dropout=0.1)
    N, C_in, C_out, H, W = 2, 4, 8, 16, 16

    key = jax.random.PRNGKey(0)
    kx, kp = jax.random.split(key)
    x = jax.random.normal(kx, (N, C_in, H, W), jnp.float32)   # NCHW, like PyTorch
    params = init_params(kp, C_in, C_out)

    out = conv51_forward_pallas(x, params)
    out = jax.block_until_ready(out)

    ref = conv51_forward_reference(x, params)
    assert out.shape == ref.shape, (out.shape, ref.shape)
    assert jnp.allclose(out, ref, atol=1e-4, rtol=1e-4), float(jnp.max(jnp.abs(out - ref)))

    print("KERNEL_OK")
</pallas_src>

<mosaic_0001>
module attributes {stable_mosaic.version = 11 : i64} {
  func.func @kernel(%arg0: i32, %arg1: memref<1x4x256xf32, #tpu.memory_space<vmem>>, %arg2: memref<5x8x4xf32, #tpu.memory_space<vmem>>, %arg3: memref<4x1xf32, #tpu.memory_space<vmem>>, %arg4: memref<4x1xf32, #tpu.memory_space<vmem>>, %arg5: memref<8x1xf32, #tpu.memory_space<vmem>>, %arg6: memref<8x1xf32, #tpu.memory_space<vmem>>, %arg7: memref<1x8x192xf32, #tpu.memory_space<vmem>>) attributes {dimension_semantics = [#tpu.dimension_semantics<parallel>], iteration_bounds = array<i64: 2>, scalar_prefetch = 0 : i64, scratch_operands = 0 : i64, tpu.core_type = #tpu.core_type<tc>, window_params = [{transform_indices = @transform_0, window_bounds = array<i64: 1, 4, 256>}, {pipeline_mode = #tpu.pipeline_mode<synchronous>, transform_indices = @transform_1, window_bounds = array<i64: 5, 8, 4>}, {pipeline_mode = #tpu.pipeline_mode<synchronous>, transform_indices = @transform_2, window_bounds = array<i64: 4, 1>}, {pipeline_mode = #tpu.pipeline_mode<synchronous>, transform_indices = @transform_3, window_bounds = array<i64: 4, 1>}, {pipeline_mode = #tpu.pipeline_mode<synchronous>, transform_indices = @transform_4, window_bounds = array<i64: 8, 1>}, {pipeline_mode = #tpu.pipeline_mode<synchronous>, transform_indices = @transform_5, window_bounds = array<i64: 8, 1>}, {transform_indices = @transform_6, window_bounds = array<i64: 1, 8, 192>}]} {
    %c0 = arith.constant 0 : index
    %c0_0 = arith.constant 0 : index
    %c0_1 = arith.constant 0 : index
    %0 = vector.load %arg1[%c0, %c0_0, %c0_1] : memref<1x4x256xf32, #tpu.memory_space<vmem>>, vector<1x4x256xf32>
    %1 = vector.shape_cast %0 : vector<1x4x256xf32> to vector<4x256xf32>
    %c0_2 = arith.constant 0 : index
    %c0_3 = arith.constant 0 : index
    %2 = vector.load %arg3[%c0_2, %c0_3] : memref<4x1xf32, #tpu.memory_space<vmem>>, vector<4x1xf32>
    %3 = vector.broadcast %2 : vector<4x1xf32> to vector<4x256xf32>
    %4 = arith.mulf %1, %3 : vector<4x256xf32>
    %c0_4 = arith.constant 0 : index
    %c0_5 = arith.constant 0 : index
    %5 = vector.load %arg4[%c0_4, %c0_5] : memref<4x1xf32, #tpu.memory_space<vmem>>, vector<4x1xf32>
    %6 = vector.broadcast %5 : vector<4x1xf32> to vector<4x256xf32>
    %7 = arith.addf %4, %6 : vector<4x256xf32>
    %8 = arith.negf %7 : vector<4x256xf32>
    %9 = math.exp %8 : vector<4x256xf32>
    %cst = arith.constant 1.000000e+00 : f32
    %10 = vector.broadcast %cst : f32 to vector<4x256xf32>
    %11 = arith.addf %10, %9 : vector<4x256xf32>
    %12 = arith.divf %10, %11 : vector<4x256xf32>
    %cst_6 = arith.constant 0.000000e+00 : f32
    %13 = vector.broadcast %cst_6 : f32 to vector<8x192xf32>
    %14 = vector.extract_strided_slice %12 {offsets = [0, 0], sizes = [4, 192], strides = [1, 1]} : vector<4x256xf32> to vector<4x192xf32>
    %c0_7 = arith.constant 0 : index
    %c0_8 = arith.constant 0 : index
    %c0_9 = arith.constant 0 : index
    %15 = vector.load %arg2[%c0_7, %c0_8, %c0_9] : memref<5x8x4xf32, #tpu.memory_space<vmem>>, vector<1x8x4xf32>
    %16 = vector.shape_cast %15 : vector<1x8x4xf32> to vector<8x4xf32>
    %cst_10 = arith.constant dense<0.000000e+00> : vector<8x192xf32>
    %17 = tpu.matmul %16, %14, %cst_10 {dimension_numbers = #tpu.dot_dimension_numbers<[1], [0], [0], [1], [0, 0, 1, 1], [], []>} : vector<8x4xf32>, vector<4x192xf32>, vector<8x192xf32> -> vector<8x192xf32>
    %18 = arith.addf %13, %17 : vector<8x192xf32>
    %19 = vector.extract_strided_slice %12 {offsets = [0, 16], sizes = [4, 192], strides = [1, 1]} : vector<4x256xf32> to vector<4x192xf32>
    %c1 = arith.constant 1 : index
    %c0_11 = arith.constant 0 : index
    %c0_12 = arith.constant 0 : index
    %20 = vector.load %arg2[%c1, %c0_11, %c0_12] : memref<5x8x4xf32, #tpu.memory_space<vmem>>, vector<1x8x4xf32>
    %21 = vector.shape_cast %20 : vector<1x8x4xf32> to vector<8x4xf32>
    %cst_13 = arith.constant dense<0.000000e+00> : vector<8x192xf32>
    %22 = tpu.matmul %21, %19, %cst_13 {dimension_numbers = #tpu.dot_dimension_numbers<[1], [0], [0], [1], [0, 0, 1, 1], [], []>} : vector<8x4xf32>, vector<4x192xf32>, vector<8x192xf32> -> vector<8x192xf32>
    %23 = arith.addf %18, %22 : vector<8x192xf32>
    %24 = vector.extract_strided_slice %12 {offsets = [0, 32], sizes = [4, 192], strides = [1, 1]} : vector<4x256xf32> to vector<4x192xf32>
    %c2 = arith.constant 2 : index
    %c0_14 = arith.constant 0 : index
    %c0_15 = arith.constant 0 : index
    %25 = vector.load %arg2[%c2, %c0_14, %c0_15] : memref<5x8x4xf32, #tpu.memory_space<vmem>>, vector<1x8x4xf32>
    %26 = vector.shape_cast %25 : vector<1x8x4xf32> to vector<8x4xf32>
    %cst_16 = arith.constant dense<0.000000e+00> : vector<8x192xf32>
    %27 = tpu.matmul %26, %24, %cst_16 {dimension_numbers = #tpu.dot_dimension_numbers<[1], [0], [0], [1], [0, 0, 1, 1], [], []>} : vector<8x4xf32>, vector<4x192xf32>, vector<8x192xf32> -> vector<8x192xf32>
    %28 = arith.addf %23, %27 : vector<8x192xf32>
    %29 = vector.extract_strided_slice %12 {offsets = [0, 48], sizes = [4, 192], strides = [1, 1]} : vector<4x256xf32> to vector<4x192xf32>
    %c3 = arith.constant 3 : index
    %c0_17 = arith.constant 0 : index
    %c0_18 = arith.constant 0 : index
    %30 = vector.load %arg2[%c3, %c0_17, %c0_18] : memref<5x8x4xf32, #tpu.memory_space<vmem>>, vector<1x8x4xf32>
    %31 = vector.shape_cast %30 : vector<1x8x4xf32> to vector<8x4xf32>
    %cst_19 = arith.constant dense<0.000000e+00> : vector<8x192xf32>
    %32 = tpu.matmul %31, %29, %cst_19 {dimension_numbers = #tpu.dot_dimension_numbers<[1], [0], [0], [1], [0, 0, 1, 1], [], []>} : vector<8x4xf32>, vector<4x192xf32>, vector<8x192xf32> -> vector<8x192xf32>
    %33 = arith.addf %28, %32 : vector<8x192xf32>
    %34 = vector.extract_strided_slice %12 {offsets = [0, 64], sizes = [4, 192], strides = [1, 1]} : vector<4x256xf32> to vector<4x192xf32>
    %c4 = arith.constant 4 : index
    %c0_20 = arith.constant 0 : index
    %c0_21 = arith.constant 0 : index
    %35 = vector.load %arg2[%c4, %c0_20, %c0_21] : memref<5x8x4xf32, #tpu.memory_space<vmem>>, vector<1x8x4xf32>
    %36 = vector.shape_cast %35 : vector<1x8x4xf32> to vector<8x4xf32>
    %cst_22 = arith.constant dense<0.000000e+00> : vector<8x192xf32>
    %37 = tpu.matmul %36, %34, %cst_22 {dimension_numbers = #tpu.dot_dimension_numbers<[1], [0], [0], [1], [0, 0, 1, 1], [], []>} : vector<8x4xf32>, vector<4x192xf32>, vector<8x192xf32> -> vector<8x192xf32>
    %38 = arith.addf %33, %37 : vector<8x192xf32>
    %c0_23 = arith.constant 0 : index
    %c0_24 = arith.constant 0 : index
    %39 = vector.load %arg5[%c0_23, %c0_24] : memref<8x1xf32, #tpu.memory_space<vmem>>, vector<8x1xf32>
    %40 = vector.broadcast %39 : vector<8x1xf32> to vector<8x192xf32>
    %41 = arith.mulf %38, %40 : vector<8x192xf32>
    %c0_25 = arith.constant 0 : index
    %c0_26 = arith.constant 0 : index
    %42 = vector.load %arg6[%c0_25, %c0_26] : memref<8x1xf32, #tpu.memory_space<vmem>>, vector<8x1xf32>
    %43 = vector.broadcast %42 : vector<8x1xf32> to vector<8x192xf32>
    %44 = arith.addf %41, %43 : vector<8x192xf32>
    %45 = arith.negf %44 : vector<8x192xf32>
    %46 = math.exp %45 : vector<8x192xf32>
    %cst_27 = arith.constant 1.000000e+00 : f32
    %47 = vector.broadcast %cst_27 : f32 to vector<8x192xf32>
    %48 = arith.addf %47, %46 : vector<8x192xf32>
    %49 = arith.divf %47, %48 : vector<8x192xf32>
    %c0_28 = arith.constant 0 : index
    %c0_29 = arith.constant 0 : index
    %c0_30 = arith.constant 0 : index
    %50 = vector.load %arg7[%c0_28, %c0_29, %c0_30] : memref<1x8x192xf32, #tpu.memory_space<vmem>>, vector<1x8x192xf32>
    %51 = vector.shape_cast %50 : vector<1x8x192xf32> to vector<8x192xf32>
    %52 = vector.shape_cast %49 : vector<8x192xf32> to vector<1x8x192xf32>
    tpu.vector_store %arg7[%c0_28, %c0_29, %c0_30], %52 {strides = array<i32>} : memref<1x8x192xf32, #tpu.memory_space<vmem>>, vector<1x8x192xf32>,
    return
  }
  func.func @transform_0(%arg0: i32) -> (i32, i32, i32) {
    %c0_i32 = arith.constant 0 : i32
    %c0_i32_0 = arith.constant 0 : i32
    %c0_i32_1 = arith.constant 0 : i32
    return %arg0, %c0_i32, %c0_i32_0 : i32, i32, i32
  }
  func.func @transform_1(%arg0: i32) -> (i32, i32, i32) {
    %c0_i32 = arith.constant 0 : i32
    %c0_i32_0 = arith.constant 0 : i32
    %c0_i32_1 = arith.constant 0 : i32
    %c0_i32_2 = arith.constant 0 : i32
    return %c0_i32, %c0_i32_0, %c0_i32_1 : i32, i32, i32
  }
  func.func @transform_2(%arg0: i32) -> (i32, i32) {
    %c0_i32 = arith.constant 0 : i32
    %c0_i32_0 = arith.constant 0 : i32
    %c0_i32_1 = arith.constant 0 : i32
    return %c0_i32, %c0_i32_0 : i32, i32
  }
  func.func @transform_3(%arg0: i32) -> (i32, i32) {
    %c0_i32 = arith.constant 0 : i32
    %c0_i32_0 = arith.constant 0 : i32
    %c0_i32_1 = arith.constant 0 : i32
    return %c0_i32, %c0_i32_0 : i32, i32
  }
  func.func @transform_4(%arg0: i32) -> (i32, i32) {
    %c0_i32 = arith.constant 0 : i32
    %c0_i32_0 = arith.constant 0 : i32
    %c0_i32_1 = arith.constant 0 : i32
    return %c0_i32, %c0_i32_0 : i32, i32
  }
  func.func @transform_5(%arg0: i32) -> (i32, i32) {
    %c0_i32 = arith.constant 0 : i32
    %c0_i32_0 = arith.constant 0 : i32
    %c0_i32_1 = arith.constant 0 : i32
    return %c0_i32, %c0_i32_0 : i32, i32
  }
  func.func @transform_6(%arg0: i32) -> (i32, i32, i32) {
    %c0_i32 = arith.constant 0 : i32
    %c0_i32_0 = arith.constant 0 : i32
    %c0_i32_1 = arith.constant 0 : i32
    return %arg0, %c0_i32, %c0_i32_0 : i32, i32, i32
  }
}

</mosaic_0001>

<bundles_post_ra>
// kernel: run.1
= control target key start
LH: loop header
LB: loop body
LE: loop exit
PB: predicated region body
PF: predicated region fallthrough
CT: control target
= control target key end

     0   :  { %11 = vsyncpa [#allocation3], 0  ;;  %s1177_s0 = inlined_call_operand.vmem [shape: f32[2,4,256], index: 0, kind: input, shape index: {}]   ;;  %s1178_s1 = inlined_call_operand.vmem [shape: f32[5,8,4], index: 1, kind: input, shape index: {}]   ;;  %s1179_s2 = inlined_call_operand.vmem [shape: f32[4,1], index: 2, kind: input, shape index: {}]   ;;  %s1180_s3 = inlined_call_operand.vmem [shape: f32[4,1], index: 3, kind: input, shape index: {}]   ;;  %s1181_s4 = inlined_call_operand.vmem [shape: f32[8,1], index: 4, kind: input, shape index: {}]   ;;  %s1182_s5 = inlined_call_operand.vmem [shape: f32[8,1], index: 5, kind: input, shape index: {}]   ;;  %s1183_s6 = inlined_call_operand.hbm [shape: f32[2,8,192], index: 6, kind: output, shape index: {}]  }
   0x1   :  { %13 = vsyncpa [#allocation3 + $0x1], 0  ;;  %s1033_s21 = smov 0   ;;  %s1035_s22 = smov 0  }
   0x2   :  { %s1037_s23 = smov 0   ;;  %s1039_s24 = smov 0  }
   0x3 LB: > { %s1054_s25 = sadd.s32 4294967295, %s988_s24   ;;  %s822_s26 = sadd.s32 4294967294, %s988_s24   ;;  %s988_s24 = sphi %s1039_s24, %s1189_s24   ;;  %s984_s23 = sphi %s1037_s23, %s1188_s23   ;;  %s980_s22 = sphi %s1035_s22, %s1187_s22   ;;  %s976_s21 = sphi %s1033_s21, %s1186_s21  }
   0x4   : > { %s1058_s27 = sadd.s32 1, %s988_s24   ;;  %s157_s28 = sadd.s32 1, %s984_s23 }
   0x5   : > { %s154_s29 = ssub.s32 %s988_s24, %s1058_s27  ;;  %p167_p0 = scmp.ne.s32.totalorder %s984_s23, %s980_s22 }
   0x6   : > { %p155_p1 = scmp.eq.s32.totalorder %s154_s29, 0  ;;  %p168_p2 = scmp.eq.s32.totalorder %s1054_s25, 1 }
   0x7   : > { %p173_p3 = scmp.ne.s32.totalorder %s980_s22, %s976_s21  ;;  %p174_p4 = scmp.eq.s32.totalorder %s822_s26, 1 }
   0x8   : > { %s1069_s30 = scalar_select %p155_p1, %s984_s23, %s157_s28  }
   0x9   : > { %p1071_p5 = por %p168_p2, %p167_p0  ;;  %p1075_p6 = por %p174_p4, %p173_p3 }
   0xa   : > { %p825_p7 = scmp.ge.s32.totalorder %s988_s24, 1  ;;  %p215_p8 = scmp.lt.s32.totalorder %s988_s24, 3 }
   0xc   : > { %p216_p9 = pnand %p825_p7, %p215_p8 }
   0xd   : > { %v251_v0 = vld [vmem:[%s1179_s2] sm:$0xf] (!%p216_p9)  ;;  %v990_v1 = vmov (!%p216_p9), 0   ;;  %p245_p10 = scmp.lt.s32.totalorder (!%p216_p9), %s1054_s25, 1  ;;  %v991_v3 = vmov (!%p216_p9), 839922192   ;;  %v259_v5 = vlaneseq (!%p216_p9) }
   0xe   : > { %219 = sbr.rel (%p216_p9) target bundleno = 573 (0x23d), region = 44  ;;  %912 = vset.pattern.permute.xlu0 (!%p216_p9), %v990_v1  ;;  %913 = vset.pattern.permute.xlu1 (!%p216_p9), %v990_v1  ;;  %v265_v2 = vld [vmem:[%s1180_s3] sm:$0xf] (!%p216_p9)  ;;  %v257_v4 = vunpack.c.l.s4 (!%p216_p9), %v991_v3  ;;  %v992_v19 = vmov (!%p216_p9), 0.0   ;;  %s993_s18 = smov (!%p216_p9), 112   ;;  %vm300_vm0 = vcmask (!%p216_p9), 1043456  }
   0xf   : > { %254 = vperm.xlu0 (!%p216_p9), %912, %v251_v0   ;;  %v260_v7 = vshrl.u32 (!%p216_p9), %v259_v5, 7  ;;  %533 = vmatprep.mubr.f32.mxu0 (!%p216_p9), %v992_v19  ;;  %s994_s19 = smov (!%p216_p9), 96   ;;  %s995_s20 = smov (!%p216_p9), 80   ;;  %v718_v22 = vld [vmem:[%s1181_s4] sm:$0xff] (!%p216_p9)  ;;  %vm460_vm1 = vcmask (!%p216_p9), 785408   ;;  %vm296_vm2 = vcmask (!%p216_p9), 31744  }
  0x10   : > { %v258_v6 = vunpack.c.0.s8 (!%p216_p9), %v257_v4  ;;  %369 = vmatprep.mubr.f32.mxu1 (!%p216_p9), %v992_v19  ;;  %s996_s26 = smov (!%p216_p9), 64   ;;  %v726_v23 = vld [vmem:[%s1182_s5] sm:$0xff] (!%p216_p9)  ;;  %v837_v27 = vld [vmem:[%s1178_s1 + $0x10] sm:$0xff] (!%p216_p9)  ;;  %vm294_vm3 = vcmask (!%p216_p9), 916480   ;;  %v830_v30 = vld [vmem:[%s1178_s1 + $0x8] sm:$0xff] (!%p216_p9)  ;;  %vm548_vm4 = vcmask (!%p216_p9), 654336  }
  0x11   : > { %v841_v34 = vld [vmem:[%s1178_s1 + $0x18] sm:$0xff] (!%p216_p9)  ;;  %vm636_vm5 = vcmask (!%p216_p9), 523264   ;;  %v285_v38 = vld [vmem:[%s1178_s1] sm:$0xff] (!%p216_p9)  ;;  %s857_s29 = sshll.u32 (!%p216_p9), %s1054_s25, 8 }
  0x12   : > { %v261_v8 = vsub.s32 (!%p216_p9), %v258_v6, %v260_v7  ;;  %v845_v40 = vld [vmem:[%s1178_s1 + $0x20] sm:$0xff] (!%p216_p9) }
  0x13   : > { %268 = vperm.xlu0 (!%p216_p9), %912, %v265_v2  }
  0x15   : > { %s246_s13 = scalar_select %p245_p10, %s1054_s25, 1 }
  0x16   : > { %s997_s25 = smov [#allocation2]  }
  0x17   : > { %s856_s14 = sshll.u32 %s246_s13, 3  ;;  %s1134_s13 = scalar_lea.hbm %s1183_s6, %s857_s29 }
  0x18   : > { %s249_s17 = scalar_lea.vmem %s1177_s0, %s856_s14  ;;  %s930_s16 = sshll.u32 %s997_s25, 4  ;;  %s931_s16 = int_to_ptr.vmem [resolvable:$false] %s930_s16 }
  0x19   : > { %v250_v11 = vld [vmem:[%s249_s17] sm:$0xff]  ;;  %s932_s17 = scalar_lea.vmem %s931_s16, 512 }
  0x8e   : > { %v255_v9 = vpop.permute.xlu0 %254 }
  0x8f   : > { %v262_v10 = vrot.slane %v255_v9, %v261_v8 }
  0x91   : > { %v264_v13 = vmul.f32 %v262_v10, %v250_v11 }
  0x92   : > { %v269_v12 = vpop.permute.xlu0 %268 }
  0x93   : > { %v276_v14 = vrot.slane %v269_v12, %v261_v8 }
  0x95   : > { %v278_v15 = vadd.f32 %v276_v14, %v264_v13 }
  0x97   : > { %v829_v16 = vmul.f32 -1.442695, %v278_v15 }
  0x99   : > { %914 = vpow2.f32 %v829_v16 }
  0xa3   : > { %v915_v17 = vpop.eup %914 }
  0xa4   : > { %v282_v18 = vadd.f32 1.0, %v915_v17 }
  0xa6   : > { %916 = vrcp.f32 %v282_v18 }
  0xb0   : > { %v917_v20 = vpop.eup %916 }
  0xb1   : > { %290 = vrot.lane.b32.xlu0 %v917_v20, %s993_s18  ;;  %456 = vrot.lane.b32.xlu1 %v917_v20, %s994_s19  ;;  %v289_v21 = vcombine.high %v917_v20, %v917_v20 }
  0xb5   : > { %544 = vrot.lane.b32.xlu0 %v917_v20, %s995_s20  ;;  %458 = vrot.lane.b32.xlu1 %v289_v21, %s994_s19 }
  0xb9   : > { %632 = vrot.lane.b32.xlu0 %v917_v20, %s996_s26  ;;  %292 = vrot.lane.b32.xlu1 %v289_v21, %s993_s18 }
  0xbd   : > { %721 = vperm.xlu0 %912, %v718_v22   ;;  %546 = vrot.lane.b32.xlu1 %v289_v21, %s995_s20 }
  0xc1   : > { %634 = vrot.lane.b32.xlu1 %v289_v21, %s996_s26  ;;  %s242_s26 = sand.u32 1, %s980_s22  }
  0xc2   : > { %s826_s28 = sshll.u32 %s242_s26, 4  ;;  %s749_s14 = scalar_lea.sflag [#allocation3], %s242_s26 }
  0xc3   : > { %s244_s9 = scalar_lea.vmem [#allocation2], %s826_s28 }
  0xc4   : > { %s763_s10 = sshll.u32 %s244_s9, 4  ;;  %s1136_s10 = int_to_ptr.vmem [resolvable:$true] %s763_s10 }
  0xc5   : > { %729 = vperm.xlu1 %913, %v726_v23   ;;  %s926_s15 = scalar_lea.vmem %s1136_s10, 256  ;;  %p933_p0 = scmp.lt.s32.totalorder %s1136_s10, %s931_s16 }
  0xc6   : > { %p927_p11 = scmp.ne.s32.totalorder %s1136_s10, %s926_s15  ;;  %p934_p1 = scmp.lt.s32.totalorder %s932_s17, %s926_s15 }
  0xc8   : > { %p928_p12 = pnand %p927_p11, %p1071_p5  ;;  %p935_p2 = por %p934_p1, %p933_p0 }
  0xca   : > { %p929_p13 = pneg %p928_p12 }
  0xcc   : > { %p936_p3 = pnand %p935_p2, %p929_p13 }
 0x123   : > { %v457_v24 = vpop.permute.xlu1 %456  ;;  %v291_v25 = vpop.permute.xlu0 %290 }
 0x127   : > { %v459_v26 = vpop.permute.xlu1 %458  ;;  %v545_v32 = vpop.permute.xlu0 %544 }
 0x128   : > { %838 = vmatprep.subr.msk.mxu0 %vm300_vm0, %v459_v26  ;;  %v461_v28 = vsel %vm460_vm1, %v457_v24, %v459_v26 }
 0x129   : > { %839 = vmatpush1.msk.msra.mxu0 %vm300_vm0, %v461_v28 }
 0x12a   : > { %840 = vmatmul.mubr.msk.f32.vlgmr.msra.gmra.mrb[0].mxu0 %vm296_vm2, %v837_v27 }
 0x12b   : > { %v293_v29 = vpop.permute.xlu1 %292  ;;  %621 = vmatprep.mubr.f32.mxu0 %v992_v19  ;;  %v633_v36 = vpop.permute.xlu0 %632 }
 0x12c   : > { %831 = vmatprep.subr.msk.mxu1 %vm300_vm0, %v293_v29  ;;  %v295_v31 = vsel %vm294_vm3, %v291_v25, %v293_v29 }
 0x12d   : > { %832 = vmatpush1.msk.msra.mxu1 %vm300_vm0, %v295_v31 }
 0x12e   : > { %834 = vmatprep.subr.msk.mxu1 %vm300_vm0, %v289_v21  ;;  %833 = vmatmul.mubr.msk.f32.vlgmr.msra.gmra.mrb[0].mxu1 %vm296_vm2, %v830_v30 }
 0x12f   : > { %835 = vmatpush1.msk.msra.mxu1 %vm300_vm0, %v917_v20  ;;  %v547_v33 = vpop.permute.xlu1 %546  ;;  %447 = vmatprep.mubr.f32.mxu1 %v992_v19 }
 0x130   : > { %v549_v35 = vsel %vm548_vm4, %v545_v32, %v547_v33  ;;  %842 = vmatprep.subr.msk.mxu0 %vm300_vm0, %v547_v33 }
 0x131   : > { %843 = vmatpush1.msk.msra.mxu0 %vm300_vm0, %v549_v35 }
 0x132   : > { %844 = vmatmul.mubr.msk.f32.vlgmr.msra.gmra.mrb[0].mxu0 %vm296_vm2, %v841_v34 }
 0x133   : > { %v635_v37 = vpop.permute.xlu1 %634  ;;  %709 = vmatprep.mubr.f32.mxu0 %v992_v19 }
 0x134   : > { %v637_v39 = vsel %vm636_vm5, %v633_v36, %v635_v37  ;;  %846 = vmatprep.subr.msk.mxu0 %vm300_vm0, %v635_v37 }
 0x135   : > { %847 = vmatpush1.msk.msra.mxu0 %vm300_vm0, %v637_v39 }
 0x136   : > { %836 = vmatmul.mubr.msk.f32.vlgmr.msra.gmra.mrb[0].mxu1 %vm296_vm2, %v285_v38 }
 0x13a   : > { %848 = vmatmul.mubr.msk.f32.vlgmr.msra.gmra.mrb[0].mxu0 %vm296_vm2, %v845_v40 }
 0x13c   : > { %v722_v46 = vpop.permute.xlu0 %721 }
 0x144   : > { %v730_v48 = vpop.permute.xlu1 %729 }
 0x209   : > { %v449_v41 = vpop.f32.mrb[0].mxu1 }
 0x20a   : > { %v451_v42 = vpop.f32.mrb[1].mxu1 }
 0x20d   : > { %v711_v43 = vpop.f32.mrb[0].mxu0 }
 0x20e   : > { %v858_v44 = vadd.f32 %v711_v43, %v449_v41  ;;  %v713_v45 = vpop.f32.mrb[1].mxu0 }
 0x20f   : > { %v859_v47 = vadd.f32 %v713_v45, %v451_v42 }
 0x210   : > { %v724_v49 = vmul.f32 %v858_v44, %v722_v46 }
 0x211   : > { %v725_v50 = vmul.f32 %v859_v47, %v722_v46 }
 0x212   : > { %v732_v51 = vadd.f32 %v730_v48, %v724_v49 }
 0x213   : > { %v733_v52 = vadd.f32 %v730_v48, %v725_v50 }
 0x214   : > { %v849_v53 = vmul.f32 -1.442695, %v732_v51 }
 0x215   : > { %v850_v54 = vmul.f32 -1.442695, %v733_v52 }
 0x216   : > { %918 = vpow2.f32 %v849_v53 }
 0x217   : > { %920 = vpow2.f32 %v850_v54 }
 0x220   : > { %v919_v55 = vpop.eup %918 }
 0x221   : > { %v921_v56 = vpop.eup %920  ;;  %v740_v57 = vadd.f32 1.0, %v919_v55 }
 0x222   : > { %v741_v58 = vadd.f32 1.0, %v921_v56 }
 0x223   : > { %922 = vrcp.f32 %v740_v57 }
 0x224   : > { %924 = vrcp.f32 %v741_v58 }
 0x22d   : > { %v923_v59 = vpop.eup %922 }
 0x22e   : > { %v925_v60 = vpop.eup %924  ;;  %746 = vst [vmem:[%s244_s9] sm:$0xff] %v923_v59 }
 0x22f   : > { %747 = vst.msk [vmem:[%s244_s9 + $0x8] sm:$0xff] %vm636_vm5, %v925_v60 }
 0x230   : > { %939 = shalt.err (!%p936_p3)
}
 0x231   : > { %s940_s18 = scalar_lea.hbm %s1134_s13, 256  ;;  %s944_s26 = scalar_lea.hbm %s1183_s6, 512 }
 0x232   : > { %p941_p4 = scmp.ne.s32.totalorder %s1134_s13, %s940_s18  ;;  %p945_p9 = scmp.lt.u32.totalorder %s1134_s13, %s1183_s6 }
 0x233   : > { %p946_p10 = scmp.lt.u32.totalorder %s944_s26, %s940_s18  ;;  %p948_p12 = scmp.lt.u32.totalorder %s940_s18, %s1134_s13 }
 0x234   : > { %p942_p7 = pnand %p941_p4, %p1071_p5 }
 0x235   : > { %p947_p11 = por %p946_p10, %p945_p9 }
 0x236   : > { %p943_p8 = pneg %p942_p7 }
 0x237   : > { %p949_p13 = por %p948_p12, %p947_p11 }
 0x239   : > { %p950_p0 = pnand %p949_p13, %p943_p8 }
 0x23b   : > { %953 = shalt.err (!%p950_p0)
}
 0x23c   : > { %866 = dma.vmem_to_hbm [thread:$0]  (%p1071_p5), %s1136_s10, 256, %s1134_s13, %s749_s14  }
 0x23d PF: > { %p872_p1 = scmp.ge.s32.totalorder %s988_s24, 2  ;;  %s775_s9 = sand.u32 1, %s976_s21  }
 0x23e   : > { %s776_s11 = scalar_lea.sflag [#allocation3], %s775_s9 }
 0x23f   : > { %p869_p2 = pnand %p872_p1, %p1075_p6 }
 0x241   : > { %971 = dma.done.wait (!%p869_p2), %s776_s11, 256  }
 0x242   : > { %973 = vsyncadd (!%p869_p2), %s776_s11, 4294967040  ;;  %p16_p3 = scmp.ge.s32.totalorder %s1058_s27, 4   ;;  %s1186_s21 = smov %s980_s22 }
 0x243   : > { %s1187_s22 = smov %s984_s23  ;;  %s1188_s23 = smov %s1069_s30 }
 0x244   : > { %s1189_s24 = smov %s1058_s27  ;;  %18 = sbr.rel (!%p16_p3) target bundleno = 3 (0x3), region = 83 }
 0x24b   :  { %781 = vsyncpa [#allocation3], 1 }
 0x24c   :  { %783 = vsyncpa [#allocation3 + $0x1], 1 }

</bundles_post_ra>
